<compile_context>
chip_gen: v7x
topology: tpu7x:2x2x1
jax: 0.10.0
libtpu: 0.0.40
codegen_flags: <defaults>
</compile_context>

<pallas_src>
import jax
import jax.numpy as jnp
from jax import lax
from jax.experimental import pallas as pl
from jax.experimental.pallas import tpu as pltpu


def _vmem_budgets():
    """Per-generation VMEM sizing (v5e/v6e: 128 MiB physical, v7x: 64 MiB per TC)."""
    try:
        cap = int(pltpu.get_tpu_info().vmem_capacity_bytes)
    except Exception:
        cap = 64 * 1024 * 1024                               # conservative (v7x-sized) fallback
    vmem_limit = min((cap * 3) // 4, 96 * 1024 * 1024)       # 96 MiB on v5e/v6e, 48 MiB on v7x
    fused_budget = vmem_limit // 2                           # ~48 MiB / ~24 MiB
    tile_budget = max(min(8 * 1024 * 1024, vmem_limit // 12), 512 * 1024)  # ~8 MiB / ~4 MiB
    return vmem_limit, fused_budget, tile_budget


def _choose_hw_tile(hw, c, itemsize, budget_bytes):
    """Largest lane-dense (multiple-of-128) spatial tile whose (C, t) slab fits the budget.
    Does NOT need to divide HW — the grid uses pl.cdiv and the tail is masked / clipped."""
    max_lanes = max(budget_bytes // max(c * itemsize, 1), 128)
    t = (max_lanes // 128) * 128
    t = min(t, pl.cdiv(hw, 128) * 128)   # no point exceeding HW rounded up to a lane multiple
    return max(t, 128)


def _make_fused_kernel(hw):
    """Single pass: pool -> 1x1 conv -> ReLU -> 1x1 conv -> sigmoid -> rescale, all on one
    resident (C, HW) image block.  Refs: x (C,HW), WdT (C,R), bd (1,R), Wu (C,R), bu (C,1)."""
    inv_hw = 1.0 / float(hw)

    def kernel(x_ref, wdT_ref, bd_ref, wu_ref, bu_ref, o_ref):
        xf = x_ref[...].astype(jnp.float32)                                       # (C, HW)
        pooled = jnp.sum(xf, axis=-1, keepdims=True) * inv_hw                     # (C, 1)
        z = jnp.sum(wdT_ref[...] * pooled, axis=0, keepdims=True) + bd_ref[...]   # (1, R)
        z = jnp.maximum(z, 0.0)
        u = jnp.sum(wu_ref[...] * z, axis=-1, keepdims=True) + bu_ref[...]        # (C, 1)
        s = 1.0 / (1.0 + jnp.exp(-u))                                             # (C, 1)
        o_ref[...] = (xf * s).astype(o_ref.dtype)

    return kernel


def _make_pool_scale_kernel(hw, t_hw):
    """Fallback pass 1: accumulate per-channel spatial sums across HW tiles (masked tail),
    then run the squeeze/excite MLP + sigmoid at the last tile."""
    inv_hw = 1.0 / float(hw)
    has_tail = (hw % t_hw) != 0

    def kernel(x_ref, wdT_ref, bd_ref, wu_ref, bu_ref, scale_ref, acc_ref):
        j = pl.program_id(1)

        @pl.when(j == 0)
        def _():
            acc_ref[...] = jnp.zeros_like(acc_ref)

        xf = x_ref[...].astype(jnp.float32)                           # (C, t_hw)
        if has_tail:   # static: only emitted when HW is not a multiple of the tile
            lane = lax.broadcasted_iota(jnp.int32, xf.shape, 1)
            xf = jnp.where((j * t_hw + lane) < hw, xf, 0.0)
        acc_ref[...] += jnp.sum(xf, axis=-1, keepdims=True)           # (C, 1)

        @pl.when(j == pl.num_programs(1) - 1)
        def _():
            pooled = acc_ref[...] * inv_hw                                            # (C, 1)
            z = jnp.sum(wdT_ref[...] * pooled, axis=0, keepdims=True) + bd_ref[...]   # (1, R)
            z = jnp.maximum(z, 0.0)
            u = jnp.sum(wu_ref[...] * z, axis=-1, keepdims=True) + bu_ref[...]        # (C, 1)
            scale_ref[...] = 1.0 / (1.0 + jnp.exp(-u))

    return kernel


def _apply_kernel(x_ref, scale_ref, o_ref):
    """Fallback pass 2: out = x * scale (f32 multiply, cast on store)."""
    o_ref[...] = (x_ref[...].astype(jnp.float32) * scale_ref[...]).astype(o_ref.dtype)


def se_block(x, w_down, b_down, w_up, b_up, *, force_two_pass=False, tile_budget_bytes=None):
    """SEBlock forward.
    x: (N, C, H, W); w_down: (R, C, 1, 1); b_down: (R,); w_up: (C, R, 1, 1); b_up: (C,)."""
    N, C, H, W = x.shape
    R = w_down.shape[0]
    HW = H * W
    itemsize = jnp.dtype(x.dtype).itemsize

    vmem_limit, fused_budget, default_tile_budget = _vmem_budgets()
    tile_budget = default_tile_budget if tile_budget_bytes is None else tile_budget_bytes

    x3 = x.reshape(N, C, HW)
    wdT = w_down.reshape(R, C).T.astype(jnp.float32)   # (C, R)
    bd = b_down.reshape(1, R).astype(jnp.float32)      # (1, R)
    wu = w_up.reshape(C, R).astype(jnp.float32)        # (C, R)
    bu = b_up.reshape(C, 1).astype(jnp.float32)        # (C, 1)

    weight_specs = [
        pl.BlockSpec((C, R), lambda n, *_: (0, 0)),
        pl.BlockSpec((1, R), lambda n, *_: (0, 0)),
        pl.BlockSpec((C, R), lambda n, *_: (0, 0)),
        pl.BlockSpec((C, 1), lambda n, *_: (0, 0)),
    ]

    # Fused-path VMEM footprint estimate: double-buffered in+out full-image blocks plus
    # ~2 f32-sized temporaries inside the body (upcast / product before cast-on-store).
    fused_bytes = 4 * C * HW * itemsize + 2 * C * HW * 4
    use_fused = (not force_two_pass) and fused_bytes <= fused_budget

    if use_fused:
        # ---- single fused pass: 1 read + 1 write of x ----
        out3 = pl.pallas_call(
            _make_fused_kernel(HW),
            out_shape=jax.ShapeDtypeStruct((N, C, HW), x.dtype),
            grid=(N,),
            in_specs=[pl.BlockSpec((None, C, HW), lambda n: (n, 0, 0))] + weight_specs,
            out_specs=pl.BlockSpec((None, C, HW), lambda n: (n, 0, 0)),
            compiler_params=pltpu.CompilerParams(
                dimension_semantics=("parallel",),
                vmem_limit_bytes=vmem_limit),
        )(x3, wdT, bd, wu, bu)
        return out3.reshape(N, C, H, W)

    # ---- fallback for oversized images: two streaming passes ----
    # TODO(synk): for batch-1 inference on v7x (2 TCs) the pooling pass below only uses one
    # core; splitting the HW range across an extra parallel axis (partial sums combined in a
    # tiny finalize) would recover the idle core.
    t_hw = _choose_hw_tile(HW, C, itemsize, tile_budget)
    num_tiles = pl.cdiv(HW, t_hw)

    scale = pl.pallas_call(
        _make_pool_scale_kernel(HW, t_hw),
        out_shape=jax.ShapeDtypeStruct((N, C, 1), jnp.float32),
        grid=(N, num_tiles),
        in_specs=[pl.BlockSpec((None, C, t_hw), lambda n, j: (n, 0, j))] + weight_specs,
        out_specs=pl.BlockSpec((None, C, 1), lambda n, j: (n, 0, 0)),
        scratch_shapes=[pltpu.VMEM((C, 1), jnp.float32)],
        compiler_params=pltpu.CompilerParams(
            dimension_semantics=("parallel", "arbitrary"),
            vmem_limit_bytes=vmem_limit),
    )(x3, wdT, bd, wu, bu)

    out3 = pl.pallas_call(
        _apply_kernel,
        out_shape=jax.ShapeDtypeStruct((N, C, HW), x.dtype),
        grid=(N, num_tiles),
        in_specs=[
            pl.BlockSpec((None, C, t_hw), lambda n, j: (n, 0, j)),
            pl.BlockSpec((None, C, 1), lambda n, j: (n, 0, 0)),
        ],
        out_specs=pl.BlockSpec((None, C, t_hw), lambda n, j: (n, 0, j)),
        compiler_params=pltpu.CompilerParams(
            dimension_semantics=("parallel", "parallel"),
            vmem_limit_bytes=vmem_limit),
    )(x3, scale)

    return out3.reshape(N, C, H, W)


def se_block_reference(x, w_down, b_down, w_up, b_up):
    """Pure-JAX reference mirroring the PyTorch forward (NCHW)."""
    N, C, H, W = x.shape
    R = w_down.shape[0]
    xf = x.astype(jnp.float32)
    pooled = jnp.mean(xf, axis=(2, 3))                                         # (N, C)
    z = jnp.einsum("nc,rc->nr", pooled, w_down.reshape(R, C).astype(jnp.float32),
                   precision=jax.lax.Precision.HIGHEST) + b_down.astype(jnp.float32)
    z = jnp.maximum(z, 0.0)
    u = jnp.einsum("nr,cr->nc", z, w_up.reshape(C, R).astype(jnp.float32),
                   precision=jax.lax.Precision.HIGHEST) + b_up.astype(jnp.float32)
    s = 1.0 / (1.0 + jnp.exp(-u))                                              # (N, C)
    return (xf * s[:, :, None, None]).astype(x.dtype)


def _check(x, w_down, b_down, w_up, b_up, atol, rtol, **kw):
    out = jax.block_until_ready(se_block(x, w_down, b_down, w_up, b_up, **kw))
    ref = se_block_reference(x, w_down, b_down, w_up, b_up)
    assert out.shape == x.shape and out.dtype == x.dtype
    a = out.astype(jnp.float32)
    b = ref.astype(jnp.float32)
    err = float(jnp.max(jnp.abs(a - b)))
    assert jnp.allclose(a, b, atol=atol, rtol=rtol), f"mismatch vs reference (max abs err {err})"


if __name__ == "__main__":
    key = jax.random.PRNGKey(0)
    kx, kwd, kbd, kwu, kbu, kx2, kx3 = jax.random.split(key, 7)

    N, C, H, W = 2, 32, 16, 16          # small NCHW test shape
    R = 8                               # internal_neurons

    w_down = 0.2 * jax.random.normal(kwd, (R, C, 1, 1), dtype=jnp.float32)
    b_down = 0.1 * jax.random.normal(kbd, (R,), dtype=jnp.float32)
    w_up = 0.2 * jax.random.normal(kwu, (C, R, 1, 1), dtype=jnp.float32)
    b_up = 0.1 * jax.random.normal(kbu, (C,), dtype=jnp.float32)

    # Case 1: fused path, f32, HW a multiple of 128.
    x = jax.random.normal(kx, (N, C, H, W), dtype=jnp.float32)
    _check(x, w_down, b_down, w_up, b_up, atol=1e-5, rtol=1e-5)

    # Case 2: fused path, bf16 input, HW=196 (typical CNN spatial size, not 128-divisible).
    xb = jax.random.normal(kx2, (N, C, 14, 14), dtype=jnp.float32).astype(jnp.bfloat16)
    _check(xb, w_down, b_down, w_up, b_up, atol=2e-2, rtol=2e-2)

    # Case 3: forced two-pass fallback with a tiny tile budget -> t_hw=128, HW=300 has a
    # ragged tail (exercises the cdiv grid, the masked pooling tail, and clipped writes).
    C3 = 16
    x3 = jax.random.normal(kx3, (1, C3, 20, 15), dtype=jnp.float32)
    wd3 = 0.2 * jax.random.normal(kwd, (R, C3, 1, 1), dtype=jnp.float32)
    wu3 = 0.2 * jax.random.normal(kwu, (C3, R, 1, 1), dtype=jnp.float32)
    bu3 = 0.1 * jax.random.normal(kbu, (C3,), dtype=jnp.float32)
    _check(x3, wd3, b_down, wu3, bu3, atol=1e-5, rtol=1e-5,
           force_two_pass=True, tile_budget_bytes=8 * 1024)

    print("KERNEL_OK")
</pallas_src>

<mosaic_0001>
module attributes {stable_mosaic.version = 11 : i64} {
  func.func @kernel(%arg0: i32, %arg1: memref<1x32x256xf32, #tpu.memory_space<vmem>>, %arg2: memref<32x8xf32, #tpu.memory_space<vmem>>, %arg3: memref<1x8xf32, #tpu.memory_space<vmem>>, %arg4: memref<32x8xf32, #tpu.memory_space<vmem>>, %arg5: memref<32x1xf32, #tpu.memory_space<vmem>>, %arg6: memref<1x32x256xf32, #tpu.memory_space<vmem>>) attributes {dimension_semantics = [#tpu.dimension_semantics<parallel>], iteration_bounds = array<i64: 2>, scalar_prefetch = 0 : i64, scratch_operands = 0 : i64, tpu.core_type = #tpu.core_type<tc>, window_params = [{transform_indices = @transform_0, window_bounds = array<i64: 1, 32, 256>}, {pipeline_mode = #tpu.pipeline_mode<synchronous>, transform_indices = @transform_1, window_bounds = array<i64: 32, 8>}, {pipeline_mode = #tpu.pipeline_mode<synchronous>, transform_indices = @transform_2, window_bounds = array<i64: 1, 8>}, {pipeline_mode = #tpu.pipeline_mode<synchronous>, transform_indices = @transform_3, window_bounds = array<i64: 32, 8>}, {pipeline_mode = #tpu.pipeline_mode<synchronous>, transform_indices = @transform_4, window_bounds = array<i64: 32, 1>}, {transform_indices = @transform_5, window_bounds = array<i64: 1, 32, 256>}]} {
    %c0 = arith.constant 0 : index
    %c0_0 = arith.constant 0 : index
    %c0_1 = arith.constant 0 : index
    %0 = vector.load %arg1[%c0, %c0_0, %c0_1] : memref<1x32x256xf32, #tpu.memory_space<vmem>>, vector<1x32x256xf32>
    %1 = vector.shape_cast %0 : vector<1x32x256xf32> to vector<32x256xf32>
    %cst = arith.constant dense<0.000000e+00> : vector<32xf32>
    %2 = vector.multi_reduction <add>, %1, %cst [1] : vector<32x256xf32> to vector<32xf32>
    %3 = vector.shape_cast %2 : vector<32xf32> to vector<32x1xf32>
    %cst_2 = arith.constant 3.906250e-03 : f32
    %4 = vector.broadcast %cst_2 : f32 to vector<32x1xf32>
    %5 = arith.mulf %3, %4 : vector<32x1xf32>
    %c0_3 = arith.constant 0 : index
    %c0_4 = arith.constant 0 : index
    %6 = vector.load %arg2[%c0_3, %c0_4] : memref<32x8xf32, #tpu.memory_space<vmem>>, vector<32x8xf32>
    %7 = vector.broadcast %5 : vector<32x1xf32> to vector<32x8xf32>
    %8 = arith.mulf %6, %7 : vector<32x8xf32>
    %cst_5 = arith.constant dense<0.000000e+00> : vector<8xf32>
    %9 = vector.multi_reduction <add>, %8, %cst_5 [0] : vector<32x8xf32> to vector<8xf32>
    %10 = vector.shape_cast %9 : vector<8xf32> to vector<1x8xf32>
    %c0_6 = arith.constant 0 : index
    %c0_7 = arith.constant 0 : index
    %11 = vector.load %arg3[%c0_6, %c0_7] : memref<1x8xf32, #tpu.memory_space<vmem>>, vector<1x8xf32>
    %12 = arith.addf %10, %11 : vector<1x8xf32>
    %cst_8 = arith.constant 0.000000e+00 : f32
    %13 = vector.broadcast %cst_8 : f32 to vector<1x8xf32>
    %14 = arith.maximumf %12, %13 : vector<1x8xf32>
    %c0_9 = arith.constant 0 : index
    %c0_10 = arith.constant 0 : index
    %15 = vector.load %arg4[%c0_9, %c0_10] : memref<32x8xf32, #tpu.memory_space<vmem>>, vector<32x8xf32>
    %16 = vector.broadcast %14 : vector<1x8xf32> to vector<32x8xf32>
    %17 = arith.mulf %15, %16 : vector<32x8xf32>
    %cst_11 = arith.constant dense<0.000000e+00> : vector<32xf32>
    %18 = vector.multi_reduction <add>, %17, %cst_11 [1] : vector<32x8xf32> to vector<32xf32>
    %19 = vector.shape_cast %18 : vector<32xf32> to vector<32x1xf32>
    %c0_12 = arith.constant 0 : index
    %c0_13 = arith.constant 0 : index
    %20 = vector.load %arg5[%c0_12, %c0_13] : memref<32x1xf32, #tpu.memory_space<vmem>>, vector<32x1xf32>
    %21 = arith.addf %19, %20 : vector<32x1xf32>
    %cst_14 = arith.constant 0.000000e+00 : f32
    %22 = vector.broadcast %cst_14 : f32 to vector<32x1xf32>
    %23 = arith.subf %22, %21 : vector<32x1xf32>
    %24 = math.exp %23 : vector<32x1xf32>
    %cst_15 = arith.constant 1.000000e+00 : f32
    %25 = vector.broadcast %cst_15 : f32 to vector<32x1xf32>
    %26 = arith.addf %25, %24 : vector<32x1xf32>
    %cst_16 = arith.constant 1.000000e+00 : f32
    %27 = vector.broadcast %cst_16 : f32 to vector<32x1xf32>
    %28 = arith.divf %27, %26 : vector<32x1xf32>
    %29 = vector.broadcast %28 : vector<32x1xf32> to vector<32x256xf32>
    %30 = arith.mulf %1, %29 : vector<32x256xf32>
    %c0_17 = arith.constant 0 : index
    %c0_18 = arith.constant 0 : index
    %c0_19 = arith.constant 0 : index
    %31 = vector.load %arg6[%c0_17, %c0_18, %c0_19] : memref<1x32x256xf32, #tpu.memory_space<vmem>>, vector<1x32x256xf32>
    %32 = vector.shape_cast %31 : vector<1x32x256xf32> to vector<32x256xf32>
    %33 = vector.shape_cast %30 : vector<32x256xf32> to vector<1x32x256xf32>
    tpu.vector_store %arg6[%c0_17, %c0_18, %c0_19], %33 {strides = array<i32>} : memref<1x32x256xf32, #tpu.memory_space<vmem>>, vector<1x32x256xf32>,
    return
  }
  func.func @transform_0(%arg0: i32) -> (i32, i32, i32) {
    %c0_i32 = arith.constant 0 : i32
    %c0_i32_0 = arith.constant 0 : i32
    %c0_i32_1 = arith.constant 0 : i32
    return %arg0, %c0_i32, %c0_i32_0 : i32, i32, i32
  }
  func.func @transform_1(%arg0: i32) -> (i32, i32) {
    %c0_i32 = arith.constant 0 : i32
    %c0_i32_0 = arith.constant 0 : i32
    %c0_i32_1 = arith.constant 0 : i32
    return %c0_i32, %c0_i32_0 : i32, i32
  }
  func.func @transform_2(%arg0: i32) -> (i32, i32) {
    %c0_i32 = arith.constant 0 : i32
    %c0_i32_0 = arith.constant 0 : i32
    %c0_i32_1 = arith.constant 0 : i32
    return %c0_i32, %c0_i32_0 : i32, i32
  }
  func.func @transform_3(%arg0: i32) -> (i32, i32) {
    %c0_i32 = arith.constant 0 : i32
    %c0_i32_0 = arith.constant 0 : i32
    %c0_i32_1 = arith.constant 0 : i32
    return %c0_i32, %c0_i32_0 : i32, i32
  }
  func.func @transform_4(%arg0: i32) -> (i32, i32) {
    %c0_i32 = arith.constant 0 : i32
    %c0_i32_0 = arith.constant 0 : i32
    %c0_i32_1 = arith.constant 0 : i32
    return %c0_i32, %c0_i32_0 : i32, i32
  }
  func.func @transform_5(%arg0: i32) -> (i32, i32, i32) {
    %c0_i32 = arith.constant 0 : i32
    %c0_i32_0 = arith.constant 0 : i32
    %c0_i32_1 = arith.constant 0 : i32
    return %arg0, %c0_i32, %c0_i32_0 : i32, i32, i32
  }
}

</mosaic_0001>

<bundles_post_ra>
// kernel: tpu_custom_call.1
= control target key start
LH: loop header
LB: loop body
LE: loop exit
PB: predicated region body
PF: predicated region fallthrough
CT: control target
= control target key end

     0   :  { %10 = vsyncpa [#allocation3], 0  ;;  %s936_s0 = inlined_call_operand.hbm [shape: f32[2,32,256], index: 0, kind: input, shape index: {}]   ;;  %s937_s1 = inlined_call_operand.vmem [shape: f32[32,8], index: 1, kind: input, shape index: {}]   ;;  %s938_s2 = inlined_call_operand.vmem [shape: f32[1,8], index: 2, kind: input, shape index: {}]   ;;  %s939_s3 = inlined_call_operand.vmem [shape: f32[32,8], index: 3, kind: input, shape index: {}]   ;;  %s940_s4 = inlined_call_operand.vmem [shape: f32[32,1], index: 4, kind: input, shape index: {}]   ;;  %s941_s5 = inlined_call_operand.hbm [shape: f32[2,32,256], index: 5, kind: output, shape index: {}]  }
   0x1   :  { %12 = vsyncpa [#allocation3 + $0x1], 0 }
   0x2   :  { %13 = vsyncpa [#allocation4], 0 }
   0x3   :  { %15 = vsyncpa [#allocation4 + $0x1], 0  ;;  %s691_s18 = smov 0   ;;  %s693_s19 = smov 0  }
   0x4   :  { %s695_s20 = smov 0   ;;  %s697_s21 = smov 0  }
   0x5 LB: > { %s712_s22 = sadd.s32 4294967295, %s652_s21   ;;  %s471_s23 = sadd.s32 4294967294, %s652_s21   ;;  %s652_s21 = sphi %s697_s21, %s954_s21   ;;  %s648_s20 = sphi %s695_s20, %s953_s20   ;;  %s644_s19 = sphi %s693_s19, %s952_s19   ;;  %s640_s18 = sphi %s691_s18, %s951_s18  }
   0x6   : > { %s716_s24 = sadd.s32 1, %s652_s21   ;;  %s28_s25 = sadd.s32 1, %s648_s20 }
   0x7   : > { %s25_s26 = ssub.s32 %s652_s21, %s716_s24  ;;  %p35_p0 = scmp.ne.s32.totalorder %s648_s20, %s644_s19 }
   0x8   : > { %p26_p1 = scmp.eq.s32.totalorder %s25_s26, 0  ;;  %p36_p2 = scmp.eq.s32.totalorder %s652_s21, 0 }
   0x9   : > { %p41_p3 = scmp.ne.s32.totalorder %s644_s19, %s640_s18  ;;  %p42_p4 = scmp.eq.s32.totalorder %s712_s22, 0 }
   0xa   : > { %s728_s27 = scalar_select %p26_p1, %s648_s20, %s28_s25  }
   0xb   : > { %p730_p5 = por %p36_p2, %p35_p0  ;;  %p734_p6 = por %p42_p4, %p41_p3 }
   0xc   : > { %p149_p7 = scmp.eq.s32.totalorder %s712_s22, 1  ;;  %p155_p8 = scmp.eq.s32.totalorder %s471_s23, 1 }
   0xd   : > { %p499_p10 = scmp.lt.s32.totalorder %s652_s21, 2  ;;  %s187_s7 = sand.u32 1, %s648_s20  }
   0xe   : > { %p741_p11 = por %p149_p7, %p35_p0  ;;  %p745_p12 = por %p155_p8, %p41_p3 }
   0xf   : > { %s485_s8 = sshll.u32 %s652_s21, 10  ;;  %s474_s9 = sshll.u32 %s187_s7, 6 }
  0x10   : > { %s945_s30 = scalar_select %p741_p11, 1, 0 }
  0x11   : > { %s946_s6 = scalar_select %p745_p12, 1, 0 }
  0x12   : > { %s754_s12 = scalar_lea.hbm %s936_s0, %s485_s8  ;;  %s191_s13 = scalar_lea.vmem [#allocation2], %s474_s9 }
  0x13   : > { %s198_s14 = sshll.u32 %s191_s13, 4  ;;  %p758_p13 = pnand %p499_p10, %p730_p5  ;;  %s762_s14 = int_to_ptr.vmem [resolvable:$true] %s198_s14 }
  0x14   : > { %s764_s16 = scalar_lea.sflag [#allocation3], %s187_s7  ;;  %s556_s17 = scalar_lea.hbm %s754_s12, 1024 }
  0x15   : > { %p557_p0 = scmp.ne.s32.totalorder %s754_s12, %s556_s17  ;;  %p558_p1 = pneg %p758_p13 }
  0x16   : > { %s561_s26 = scalar_lea.hbm %s936_s0, 2048  ;;  %p562_p4 = scmp.lt.u32.totalorder %s754_s12, %s936_s0 }
  0x17   : > { %p559_p2 = pnand %p558_p1, %p557_p0  ;;  %p563_p5 = scmp.lt.u32.totalorder %s561_s26, %s556_s17 }
  0x18   : > { %p565_p8 = scmp.lt.u32.totalorder %s556_s17, %s754_s12 }
  0x19   : > { %p560_p3 = pneg %p559_p2  ;;  %p564_p7 = por %p563_p5, %p562_p4 }
  0x1b   : > { %p566_p10 = por %p565_p8, %p564_p7 }
  0x1d   : > { %p567_p9 = pnand %p566_p10, %p560_p3 }
  0x1f   : > { %570 = shalt.err (!%p567_p9)
}
  0x20   : > { %s571_s7 = scalar_lea.vmem %s762_s14, 1024  ;;  %s654_s9 = smov [#allocation2]  }
  0x21   : > { %p572_p0 = scmp.ne.s32.totalorder %s762_s14, %s571_s7  ;;  %s576_s10 = sshll.u32 %s654_s9, 4  ;;  %s577_s10 = int_to_ptr.vmem [resolvable:$false] %s576_s10 }
  0x22   : > { %s578_s11 = scalar_lea.vmem %s577_s10, 2048  ;;  %p579_p11 = scmp.lt.s32.totalorder %s762_s14, %s577_s10 }
  0x23   : > { %p574_p2 = pnand %p572_p0, %p558_p1  ;;  %p580_p4 = scmp.lt.s32.totalorder %s578_s11, %s571_s7 }
  0x25   : > { %p575_p12 = pneg %p574_p2  ;;  %p581_p5 = por %p580_p4, %p579_p11 }
  0x27   : > { %p582_p7 = pnand %p581_p5, %p575_p12 }
  0x29   : > { %585 = shalt.err (!%p582_p7)
}
  0x2a   : > { %s655_s13 = smov 256   ;;  %s656_s17 = smov 16  }
  0x2b   : > { %494 = dma.hbm_to_vmem [thread:$0]  (!%p758_p13), %s754_s12, 1024, %s762_s14, %s764_s16, %s655_s13, %s655_s13, %s656_s17  }
  0x2c   : > { %p477_p9 = scmp.ge.s32.totalorder %s652_s21, 1  ;;  %p206_p1 = scmp.lt.s32.totalorder %s652_s21, 3 }
  0x2e   : > { %p207_p3 = pnand %p477_p9, %p206_p1 }
  0x2f   : > { %s795_s23 = sand.u32 (!%p207_p3), 1, %s644_s19  }
  0x30   : > { %210 = sbr.rel (%p207_p3) target bundleno = 563 (0x233), region = 40  ;;  %s478_s25 = sshll.u32 (!%p207_p3), %s795_s23, 6 }
  0x31   : > { %s213_s26 = scalar_lea.sflag (!%p207_p3), [#allocation3], %s795_s23  ;;  %s216_s28 = scalar_lea.vmem (!%p207_p3), [#allocation2], %s478_s25 }
  0x37   : > { %631 = dma.done.wait (%p734_p6), %s213_s26, 1024  }
  0x38   : > { %633 = vsyncadd (%p734_p6), %s213_s26, 4294966272  ;;  %v805_v0 = vld [vmem:[%s216_s28] sm:$0xff]  ;;  %v807_v1 = vld [vmem:[%s216_s28 + $0x8] sm:$0xff]  ;;  %vm275_vm0 = vcmask 64512   ;;  %v296_v38 = vlaneseq  ;;  %v657_v60 = vmov 0   ;;  %s242_s26 = scalar_lea.vmem [#allocation5], %s478_s25 }
  0x39   : > { %v809_v2 = vld [vmem:[%s216_s28 + $0x20] sm:$0xff]  ;;  %v251_v3 = vadd.f32 %v807_v1, %v805_v0  ;;  %v813_v4 = vld [vmem:[%s216_s28 + $0x28] sm:$0xff]  ;;  %v815_v5 = vld [vmem:[%s216_s28 + $0x10] sm:$0xff]  ;;  %539 = vset.pattern.permute.xlu1 %v657_v60  ;;  %538 = vset.pattern.permute.xlu0 %v657_v60  ;;  %s486_s29 = sshll.u32 %s712_s22, 10  ;;  %s385_s22 = scalar_lea.sflag [#allocation4], %s795_s23 }
  0x3a   : > { %v817_v6 = vld [vmem:[%s216_s28 + $0x18] sm:$0xff]  ;;  %v257_v7 = vadd.f32 %v813_v4, %v809_v2  ;;  %v821_v8 = vld [vmem:[%s216_s28 + $0x30] sm:$0xff]  ;;  %v267_v15 = vld [vmem:[%s937_s1] sm:$0xff]  ;;  %v297_v41 = vshrl.u32 %v296_v38, 7  ;;  %s890_s14 = scalar_lea.hbm %s941_s5, %s486_s29  ;;  %p948_p11 = scmp.ne.s32.totalorder %s945_s30, 0 }
  0x3b   : > { %v823_v9 = vld [vmem:[%s216_s28 + $0x38] sm:$0xff]  ;;  %252 = vadd.xlane.f32.xlu0 %v251_v3  ;;  %v254_v10 = vadd.f32 %v817_v6, %v815_v5  ;;  %v269_v17 = vld [vmem:[%s937_s1 + $0x10] sm:$0xff]  ;;  %v268_v18 = vld [vmem:[%s937_s1 + $0x8] sm:$0xff]  ;;  %s398_s28 = sshll.u32 %s242_s26, 4  ;;  %s658_s16 = smov [#allocation5]   ;;  %s885_s28 = int_to_ptr.vmem [resolvable:$true] %s398_s28 }
  0x3c   : > { %258 = vadd.xlane.f32.xlu1 %v257_v7  ;;  %v260_v11 = vadd.f32 %v823_v9, %v821_v8  ;;  %v270_v22 = vld [vmem:[%s937_s1 + $0x18] sm:$0xff]  ;;  %v289_v42 = vld [vmem:[%s938_s2] sm:$0x1]  ;;  %v298_v45 = vsub.s32 0, %v297_v41  ;;  %v293_v47 = vld [vmem:[%s939_s3 + $0x8] sm:$0xff]  ;;  %s586_s15 = scalar_lea.vmem %s885_s28, 1024 }
  0x3d   : > { %v292_v48 = vld [vmem:[%s939_s3] sm:$0xff]  ;;  %v295_v50 = vld [vmem:[%s939_s3 + $0x18] sm:$0xff]  ;;  %v294_v51 = vld [vmem:[%s939_s3 + $0x10] sm:$0xff]  ;;  %p587_p6 = scmp.ne.s32.totalorder %s885_s28, %s586_s15  ;;  %s590_s8 = sshll.u32 %s658_s16, 4  ;;  %s591_s8 = int_to_ptr.vmem [resolvable:$false] %s590_s8 }
  0x3e   : > { %v317_v61 = vld [vmem:[%s940_s4 + $0x8] sm:$0xff]  ;;  %v316_v62 = vld [vmem:[%s940_s4] sm:$0xff]  ;;  %s592_s7 = scalar_lea.vmem %s591_s8, 2048  ;;  %p593_p8 = scmp.lt.s32.totalorder %s885_s28, %s591_s8 }
  0x3f   : > { %255 = vadd.xlane.f32.xlu0 %v254_v10  ;;  %p588_p12 = pnand %p587_p6, %p948_p11  ;;  %p594_p10 = scmp.lt.s32.totalorder %s592_s7, %s586_s15 }
  0x40   : > { %261 = vadd.xlane.f32.xlu1 %v260_v11  ;;  %v319_v11 = vld [vmem:[%s940_s4 + $0x18] sm:$0xff] }
  0x41   : > { %p589_p13 = pneg %p588_p12  ;;  %p595_p0 = por %p594_p10, %p593_p8 }
  0x43   : > { %p596_p2 = pnand %p595_p0, %p589_p13 }
  0xc8   : > { %v253_v12 = vpop.xlane.xlu0 %252 }
  0xc9   : > { %v263_v13 = vmul.f32 0.00390625, %v253_v12  ;;  %v259_v14 = vpop.xlane.xlu1 %258  ;;  %v318_v12 = vld [vmem:[%s940_s4 + $0x10] sm:$0xff] }
  0xca   : > { %v265_v16 = vmul.f32 0.00390625, %v259_v14 }
  0xcb   : > { %v271_v20 = vmul.f32 %v267_v15, %v263_v13 }
  0xcc   : > { %v256_v19 = vpop.xlane.xlu0 %255  ;;  %v273_v25 = vmul.f32 %v269_v17, %v265_v16 }
  0xcd   : > { %v264_v21 = vmul.f32 0.00390625, %v256_v19  ;;  %v262_v23 = vpop.xlane.xlu1 %261  ;;  %v276_v28 = vsel %vm275_vm0, %v271_v20, 0.0 }
  0xce   : > { %v266_v24 = vmul.f32 0.00390625, %v262_v23  ;;  %v279_v31 = vsel %vm275_vm0, %v273_v25, 0.0 }
  0xcf   : > { %v272_v26 = vmul.f32 %v268_v18, %v264_v21 }
  0xd0   : > { %v274_v27 = vmul.f32 %v270_v22, %v266_v24 }
  0xd1   : > { %v277_v29 = vsel %vm275_vm0, %v272_v26, 0.0 }
  0xd2   : > { %v278_v30 = vadd.f32 %v277_v29, %v276_v28  ;;  %v281_v32 = vsel %vm275_vm0, %v274_v27, 0.0 }
  0xd4   : > { %v280_v33 = vadd.f32 %v279_v31, %v278_v30 }
  0xd6   : > { %v282_v34 = vadd.f32 %v281_v32, %v280_v33 }
  0xd8   : > { %v283_v35 = vrot.slane %v282_v34, 4 }
  0xda   : > { %v284_v36 = vadd.f32 %v283_v35, %v282_v34 }
  0xdc   : > { %v285_v37 = vrot.slane %v284_v36, 2 }
  0xde   : > { %v286_v39 = vadd.f32 %v285_v37, %v284_v36 }
  0xe0   : > { %v287_v40 = vrot.slane %v286_v39, 1 }
  0xe2   : > { %v288_v43 = vadd.f32 %v287_v40, %v286_v39 }
  0xe4   : > { %v290_v44 = vadd.f32 %v289_v42, %v288_v43 }
  0xe6   : > { %v291_v46 = vmax.f32 %v290_v44, 0.0 }
  0xe8   : > { %v299_v49 = vrot.slane %v291_v46, %v298_v45 }
  0xea   : > { %v301_v52 = vmul.f32 %v299_v49, %v293_v47  ;;  %v300_v53 = vmul.f32 %v299_v49, %v292_v48  ;;  %v303_v56 = vmul.f32 %v299_v49, %v295_v50  ;;  %v302_v57 = vmul.f32 %v299_v49, %v294_v51 }
  0xec   : > { %v307_v54 = vsel %vm275_vm0, %v301_v52, 0.0  ;;  %v304_v55 = vsel %vm275_vm0, %v300_v53, 0.0  ;;  %v313_v58 = vsel %vm275_vm0, %v303_v56, 0.0  ;;  %v310_v59 = vsel %vm275_vm0, %v302_v57, 0.0 }
  0xed   : > { %308 = vadd.xlane.f32.xlu1 %v307_v54  ;;  %305 = vadd.xlane.f32.xlu0 %v304_v55 }
  0xf1   : > { %314 = vadd.xlane.f32.xlu1 %v313_v58  ;;  %311 = vadd.xlane.f32.xlu0 %v310_v59 }
 0x17a   : > { %v309_v63 = vpop.xlane.xlu1 %308  ;;  %v306_v3 = vpop.xlane.xlu0 %305 }
 0x17b   : > { %v321_v7 = vadd.f32 %v317_v61, %v309_v63  ;;  %v320_v10 = vadd.f32 %v316_v62, %v306_v3 }
 0x17d   : > { %v325_v13 = vsub.f32 0.0, %v321_v7  ;;  %v324_v14 = vsub.f32 0.0, %v320_v10 }
 0x17e   : > { %v315_v15 = vpop.xlane.xlu1 %314  ;;  %v312_v16 = vpop.xlane.xlu0 %311 }
 0x17f   : > { %v330_v17 = vmul.f32 1.442695, %v325_v13  ;;  %v328_v18 = vmul.f32 1.442695, %v324_v14  ;;  %v323_v19 = vadd.f32 %v319_v11, %v315_v15  ;;  %v322_v20 = vadd.f32 %v318_v12, %v312_v16 }
 0x181   : > { %540 = vpow2.f32 %v330_v17  ;;  %v327_v21 = vsub.f32 0.0, %v323_v19  ;;  %v326_v22 = vsub.f32 0.0, %v322_v20 }
 0x182   : > { %542 = vpow2.f32 %v328_v18 }
 0x183   : > { %v334_v23 = vmul.f32 1.442695, %v327_v21  ;;  %v332_v24 = vmul.f32 1.442695, %v326_v22 }
 0x185   : > { %544 = vpow2.f32 %v334_v23 }
 0x186   : > { %546 = vpow2.f32 %v332_v24 }
 0x18b   : > { %v541_v25 = vpop.eup %540 }
 0x18c   : > { %v543_v26 = vpop.eup %542  ;;  %v337_v27 = vadd.f32 1.0, %v541_v25 }
 0x18d   : > { %v336_v28 = vadd.f32 1.0, %v543_v26 }
 0x18e   : > { %548 = vrcp.f32 %v337_v27 }
 0x18f   : > { %v545_v29 = vpop.eup %544  ;;  %550 = vrcp.f32 %v336_v28 }
 0x190   : > { %v547_v30 = vpop.eup %546  ;;  %v339_v32 = vadd.f32 1.0, %v545_v29 }
 0x191   : > { %v338_v31 = vadd.f32 1.0, %v547_v30 }
 0x193   : > { %552 = vrcp.f32 %v338_v31 }
 0x194   : > { %554 = vrcp.f32 %v339_v32 }
 0x198   : > { %v549_v33 = vpop.eup %548 }
 0x199   : > { %v551_v34 = vpop.eup %550  ;;  %355 = vperm.xlu1 %539, %v549_v33  }
 0x19a   : > { %350 = vperm.xlu0 %538, %v551_v34  }
 0x19d   : > { %v553_v35 = vpop.eup %552 }
 0x19e   : > { %360 = vperm.xlu1 %539, %v553_v35   ;;  %v555_v36 = vpop.eup %554 }
 0x1a2   : > { %365 = vperm.xlu1 %539, %v555_v36  }
 0x218   : > { %v356_v37 = vpop.permute.xlu1 %355 }
 0x219   : > { %v370_v38 = vmul.f32 %v356_v37, %v815_v5  ;;  %v371_v39 = vmul.f32 %v356_v37, %v817_v6  ;;  %v351_v40 = vpop.permute.xlu0 %350 }
 0x21a   : > { %v368_v41 = vmul.f32 %v351_v40, %v805_v0  ;;  %v369_v42 = vmul.f32 %v351_v40, %v807_v1 }
 0x21b   : > { %378 = vst [vmem:[%s242_s26 + $0x10] sm:$0xff] %v370_v38  ;;  %379 = vst [vmem:[%s242_s26 + $0x18] sm:$0xff] %v371_v39 }
 0x21c   : > { %376 = vst [vmem:[%s242_s26] sm:$0xff] %v368_v41  ;;  %377 = vst [vmem:[%s242_s26 + $0x8] sm:$0xff] %v369_v42 }
 0x21d   : > { %v361_v43 = vpop.permute.xlu1 %360 }
 0x21e   : > { %v372_v44 = vmul.f32 %v361_v43, %v809_v2  ;;  %v373_v5 = vmul.f32 %v361_v43, %v813_v4 }
 0x220   : > { %380 = vst [vmem:[%s242_s26 + $0x20] sm:$0xff] %v372_v44  ;;  %381 = vst [vmem:[%s242_s26 + $0x28] sm:$0xff] %v373_v5 }
 0x221   : > { %v366_v0 = vpop.permute.xlu1 %365 }
 0x222   : > { %v374_v1 = vmul.f32 %v366_v0, %v821_v8  ;;  %v375_v2 = vmul.f32 %v366_v0, %v823_v9 }
 0x224   : > { %382 = vst [vmem:[%s242_s26 + $0x30] sm:$0xff] %v374_v1  ;;  %383 = vst [vmem:[%s242_s26 + $0x38] sm:$0xff] %v375_v2 }
 0x225   : > { %599 = shalt.err (!%p596_p2)
}
 0x226   : > { %s600_s9 = scalar_lea.hbm %s890_s14, 1024  ;;  %s604_s13 = scalar_lea.hbm %s941_s5, 2048 }
 0x227   : > { %p601_p4 = scmp.ne.s32.totalorder %s890_s14, %s600_s9  ;;  %p605_p9 = scmp.lt.u32.totalorder %s890_s14, %s941_s5 }
 0x228   : > { %p606_p1 = scmp.lt.u32.totalorder %s604_s13, %s600_s9  ;;  %p608_p6 = scmp.lt.u32.totalorder %s600_s9, %s890_s14 }
 0x229   : > { %p602_p5 = pnand %p601_p4, %p948_p11 }
 0x22a   : > { %p607_p3 = por %p606_p1, %p605_p9 }
 0x22b   : > { %p603_p7 = pneg %p602_p5 }
 0x22c   : > { %p609_p12 = por %p608_p6, %p607_p3 }
 0x22e   : > { %p610_p13 = pnand %p609_p12, %p603_p7 }
 0x230   : > { %613 = shalt.err (!%p610_p13)
}
 0x231   : > { %s659_s29 = smov 256   ;;  %s660_s25 = smov 16  }
 0x232   : > { %489 = dma.vmem_to_hbm [thread:$0]  (%p948_p11), %s885_s28, 1024, %s890_s14, %s385_s22, %s659_s29, %s659_s29, %s660_s25  }
 0x233 PF: > { %s413_s12 = sand.u32 1, %s640_s18   ;;  %p949_p8 = scmp.ne.s32.totalorder %s946_s6, 0 }
 0x234   : > { %p950_p10 = scmp.ge.s32.totalorder %s652_s21, 2  ;;  %s414_s15 = scalar_lea.sflag [#allocation4], %s413_s12 }
 0x236   : > { %p496_p0 = pnand %p950_p10, %p949_p8 }
 0x238   : > { %635 = dma.done.wait (!%p496_p0), %s414_s15, 1024  }
 0x239   : > { %637 = vsyncadd (!%p496_p0), %s414_s15, 4294966272  ;;  %p18_p2 = scmp.ge.s32.totalorder %s716_s24, 4   ;;  %s951_s18 = smov %s644_s19 }
 0x23a   : > { %s952_s19 = smov %s648_s20  ;;  %s953_s20 = smov %s728_s27 }
 0x23b   : > { %s954_s21 = smov %s716_s24  ;;  %20 = sbr.rel (!%p18_p2) target bundleno = 5 (0x5), region = 85 }
 0x242   :  { %419 = vsyncpa [#allocation3], 1 }
 0x243   :  { %421 = vsyncpa [#allocation3 + $0x1], 1 }
 0x244   :  { %422 = vsyncpa [#allocation4], 1 }
 0x245   :  { %424 = vsyncpa [#allocation4 + $0x1], 1 }

</bundles_post_ra>
